<compile_context>
chip_gen: v7x
topology: tpu7x:2x2x1
jax: 0.10.0
libtpu: 0.0.40
codegen_flags: <defaults>
</compile_context>

<pallas_src>
import numpy as np
import jax
import jax.numpy as jnp
from jax.experimental import pallas as pl
from jax.experimental.pallas import tpu as pltpu

NEG = -1e30  # masked-candidate score (exp underflows to exactly 0 in f32)


# ------------------------------ Pallas kernel ------------------------------
def _loc_clf_kernel(logits_ref, sel_ref, use_ref, valid_ref, out_ref):
    # logits_ref : [B, S, V]      raw logits
    # sel_ref    : [S, V, CP]     one-hot: sel[s, tok, c] = 1 iff candidate c
    #                             uses token `tok` at absolute position s
    # use_ref    : [S, CP]        1 iff position s participates for candidate c
    # valid_ref  : [1, CP]        1 for real candidates, 0 for padding columns
    # out_ref    : [B, CP]        softmax over candidates (padded cols -> 0)
    x = logits_ref[...]                      # tiny, stays in vregs
    use = use_ref[...]
    valid = valid_ref[...]
    b, s_len, _ = x.shape
    cp = valid.shape[1]

    prob = jnp.ones((b, cp), jnp.float32)
    for s in range(s_len):                   # static unroll, S is small
        # gather-as-matmul on the MXU: g[b, c] = logits[b, s, cand_c[s - st]]
        g = jnp.dot(x[:, s, :], sel_ref[s],  # (B,V) @ (V,CP) -> (B,CP)
                    preferred_element_type=jnp.float32)
        u = use[s:s + 1, :]                  # [1, CP]
        prob = prob * (g * u + (1.0 - u))    # unused positions multiply by 1

    # masked softmax over the (128-padded) candidate axis
    scores = prob * valid + (1.0 - valid) * NEG
    m = jnp.max(scores, axis=-1, keepdims=True)
    e = jnp.exp(scores - m)
    denom = jnp.sum(e, axis=-1, keepdims=True)
    out_ref[...] = e * pl.reciprocal(denom, approx=True)


def t5_location_classification(logits, sel, use, valid, num_candidates):
    """Single fused pallas_call; returns [B, num_candidates] probabilities."""
    B, S, V = logits.shape
    CP = valid.shape[1]
    out_padded = pl.pallas_call(
        _loc_clf_kernel,
        grid=(1,),
        in_specs=[pl.BlockSpec((B, S, V), lambda i: (0, 0, 0)),
                  pl.BlockSpec((S, V, CP), lambda i: (0, 0, 0)),
                  pl.BlockSpec((S, CP), lambda i: (0, 0)),
                  pl.BlockSpec((1, CP), lambda i: (0, 0))],
        out_specs=pl.BlockSpec((B, CP), lambda i: (0, 0)),
        out_shape=jax.ShapeDtypeStruct((B, CP), jnp.float32),
        compiler_params=pltpu.CompilerParams(
            dimension_semantics=("arbitrary",)),
    )(logits, sel, use, valid)
    return out_padded[:, :num_candidates]


# ------------------------------ host-side setup -----------------------------
def build_selection(candidates, st_token, ed_token, seq_len, vocab, c_pad):
    """Encode (st:ed slice + token indexing + variable candidate length) as
    dense one-hot selection / usage / validity matrices (numpy, trace-time)."""
    sel = np.zeros((seq_len, vocab, c_pad), np.float32)
    use = np.zeros((seq_len, c_pad), np.float32)
    valid = np.zeros((1, c_pad), np.float32)
    max_len = ed_token - st_token
    for c, toks in enumerate(candidates):
        assert len(toks) <= max_len, "candidate longer than token_loc window"
        valid[0, c] = 1.0
        for i, tok in enumerate(toks):
            sel[st_token + i, tok, c] = 1.0
            use[st_token + i, c] = 1.0
    return jnp.asarray(sel), jnp.asarray(use), jnp.asarray(valid)


def ref_forward(logits, st_token, ed_token, candidates):
    """Pure-JAX replica of the PyTorch forward (for correctness check)."""
    lg = logits[:, st_token:ed_token, :]
    cols = []
    for toks in candidates:
        p = lg[:, 0, toks[0]]
        for i in range(1, len(toks)):
            p = p * lg[:, i, toks[i]]
        cols.append(p[:, None])
    all_prob = jnp.concatenate(cols, axis=-1)
    return jax.nn.softmax(all_prob, axis=-1)


# ---------------------------------- main ------------------------------------
if __name__ == "__main__":
    B, S, V = 2, 8, 128           # small shapes; V chosen lane-dense (128)
    ST_TOKEN, ED_TOKEN = 1, 5     # token_loc
    CANDIDATES = ((3, 17, 42),    # candidate_output_token (variable lengths)
                  (7, 99),
                  (11, 23, 56, 90),
                  (15, 64, 2),
                  (5,),
                  (120, 8, 33))
    C = len(CANDIDATES)
    C_PAD = 128                   # lane-dense padded candidate axis

    key = jax.random.PRNGKey(0)
    logits = jax.random.normal(key, (B, S, V), jnp.float32)

    sel, use, valid = build_selection(CANDIDATES, ST_TOKEN, ED_TOKEN, S, V, C_PAD)

    fwd = jax.jit(lambda lg: t5_location_classification(lg, sel, use, valid, C))
    out = fwd(logits)
    jax.block_until_ready(out)

    ref = ref_forward(logits, ST_TOKEN, ED_TOKEN, CANDIDATES)

    assert out.shape == (B, C), out.shape
    assert out.dtype == jnp.float32
    assert bool(jnp.all(jnp.isfinite(out)))
    np.testing.assert_allclose(np.asarray(out), np.asarray(ref),
                               rtol=2e-3, atol=1e-6)
    print("KERNEL_OK")
</pallas_src>

<mosaic_0001>
module attributes {stable_mosaic.version = 11 : i64} {
  func.func @_loc_clf_kernel(%arg0: i32, %arg1: memref<2x8x128xf32, #tpu.memory_space<vmem>>, %arg2: memref<8x128x128xf32, #tpu.memory_space<vmem>>, %arg3: memref<8x128xf32, #tpu.memory_space<vmem>>, %arg4: memref<1x128xf32, #tpu.memory_space<vmem>>, %arg5: memref<2x128xf32, #tpu.memory_space<vmem>>) attributes {dimension_semantics = [#tpu.dimension_semantics<arbitrary>], iteration_bounds = array<i64: 1>, scalar_prefetch = 0 : i64, scratch_operands = 0 : i64, tpu.core_type = #tpu.core_type<tc>, window_params = [{pipeline_mode = #tpu.pipeline_mode<synchronous>, transform_indices = @transform_0, window_bounds = array<i64: 2, 8, 128>}, {pipeline_mode = #tpu.pipeline_mode<synchronous>, transform_indices = @transform_1, window_bounds = array<i64: 8, 128, 128>}, {pipeline_mode = #tpu.pipeline_mode<synchronous>, transform_indices = @transform_2, window_bounds = array<i64: 8, 128>}, {pipeline_mode = #tpu.pipeline_mode<synchronous>, transform_indices = @transform_3, window_bounds = array<i64: 1, 128>}, {pipeline_mode = #tpu.pipeline_mode<synchronous>, transform_indices = @transform_4, window_bounds = array<i64: 2, 128>}]} {
    %c0 = arith.constant 0 : index
    %c0_0 = arith.constant 0 : index
    %c0_1 = arith.constant 0 : index
    %0 = vector.load %arg1[%c0, %c0_0, %c0_1] : memref<2x8x128xf32, #tpu.memory_space<vmem>>, vector<2x8x128xf32>
    %c0_2 = arith.constant 0 : index
    %c0_3 = arith.constant 0 : index
    %1 = vector.load %arg3[%c0_2, %c0_3] : memref<8x128xf32, #tpu.memory_space<vmem>>, vector<8x128xf32>
    %c0_4 = arith.constant 0 : index
    %c0_5 = arith.constant 0 : index
    %2 = vector.load %arg4[%c0_4, %c0_5] : memref<1x128xf32, #tpu.memory_space<vmem>>, vector<1x128xf32>
    %cst = arith.constant 1.000000e+00 : f32
    %3 = vector.broadcast %cst : f32 to vector<2x128xf32>
    %4 = vector.extract_strided_slice %0 {offsets = [0, 0, 0], sizes = [2, 1, 128], strides = [1, 1, 1]} : vector<2x8x128xf32> to vector<2x1x128xf32>
    %5 = vector.shape_cast %4 : vector<2x1x128xf32> to vector<2x128xf32>
    %c0_6 = arith.constant 0 : index
    %c0_7 = arith.constant 0 : index
    %c0_8 = arith.constant 0 : index
    %6 = vector.load %arg2[%c0_6, %c0_7, %c0_8] : memref<8x128x128xf32, #tpu.memory_space<vmem>>, vector<1x128x128xf32>
    %7 = vector.shape_cast %6 : vector<1x128x128xf32> to vector<128x128xf32>
    %cst_9 = arith.constant dense<0.000000e+00> : vector<2x128xf32>
    %8 = tpu.matmul %5, %7, %cst_9 {dimension_numbers = #tpu.dot_dimension_numbers<[1], [0], [0], [1], [0, 0, 1, 1], [], []>} : vector<2x128xf32>, vector<128x128xf32>, vector<2x128xf32> -> vector<2x128xf32>
    %9 = vector.extract_strided_slice %1 {offsets = [0, 0], sizes = [1, 128], strides = [1, 1]} : vector<8x128xf32> to vector<1x128xf32>
    %10 = vector.broadcast %9 : vector<1x128xf32> to vector<2x128xf32>
    %11 = arith.mulf %8, %10 : vector<2x128xf32>
    %cst_10 = arith.constant 1.000000e+00 : f32
    %12 = vector.broadcast %cst_10 : f32 to vector<1x128xf32>
    %13 = arith.subf %12, %9 : vector<1x128xf32>
    %14 = vector.broadcast %13 : vector<1x128xf32> to vector<2x128xf32>
    %15 = arith.addf %11, %14 : vector<2x128xf32>
    %16 = arith.mulf %3, %15 : vector<2x128xf32>
    %17 = vector.extract_strided_slice %0 {offsets = [0, 1, 0], sizes = [2, 1, 128], strides = [1, 1, 1]} : vector<2x8x128xf32> to vector<2x1x128xf32>
    %18 = vector.shape_cast %17 : vector<2x1x128xf32> to vector<2x128xf32>
    %c1 = arith.constant 1 : index
    %c0_11 = arith.constant 0 : index
    %c0_12 = arith.constant 0 : index
    %19 = vector.load %arg2[%c1, %c0_11, %c0_12] : memref<8x128x128xf32, #tpu.memory_space<vmem>>, vector<1x128x128xf32>
    %20 = vector.shape_cast %19 : vector<1x128x128xf32> to vector<128x128xf32>
    %cst_13 = arith.constant dense<0.000000e+00> : vector<2x128xf32>
    %21 = tpu.matmul %18, %20, %cst_13 {dimension_numbers = #tpu.dot_dimension_numbers<[1], [0], [0], [1], [0, 0, 1, 1], [], []>} : vector<2x128xf32>, vector<128x128xf32>, vector<2x128xf32> -> vector<2x128xf32>
    %22 = vector.extract_strided_slice %1 {offsets = [1, 0], sizes = [1, 128], strides = [1, 1]} : vector<8x128xf32> to vector<1x128xf32>
    %23 = vector.broadcast %22 : vector<1x128xf32> to vector<2x128xf32>
    %24 = arith.mulf %21, %23 : vector<2x128xf32>
    %cst_14 = arith.constant 1.000000e+00 : f32
    %25 = vector.broadcast %cst_14 : f32 to vector<1x128xf32>
    %26 = arith.subf %25, %22 : vector<1x128xf32>
    %27 = vector.broadcast %26 : vector<1x128xf32> to vector<2x128xf32>
    %28 = arith.addf %24, %27 : vector<2x128xf32>
    %29 = arith.mulf %16, %28 : vector<2x128xf32>
    %30 = vector.extract_strided_slice %0 {offsets = [0, 2, 0], sizes = [2, 1, 128], strides = [1, 1, 1]} : vector<2x8x128xf32> to vector<2x1x128xf32>
    %31 = vector.shape_cast %30 : vector<2x1x128xf32> to vector<2x128xf32>
    %c2 = arith.constant 2 : index
    %c0_15 = arith.constant 0 : index
    %c0_16 = arith.constant 0 : index
    %32 = vector.load %arg2[%c2, %c0_15, %c0_16] : memref<8x128x128xf32, #tpu.memory_space<vmem>>, vector<1x128x128xf32>
    %33 = vector.shape_cast %32 : vector<1x128x128xf32> to vector<128x128xf32>
    %cst_17 = arith.constant dense<0.000000e+00> : vector<2x128xf32>
    %34 = tpu.matmul %31, %33, %cst_17 {dimension_numbers = #tpu.dot_dimension_numbers<[1], [0], [0], [1], [0, 0, 1, 1], [], []>} : vector<2x128xf32>, vector<128x128xf32>, vector<2x128xf32> -> vector<2x128xf32>
    %35 = vector.extract_strided_slice %1 {offsets = [2, 0], sizes = [1, 128], strides = [1, 1]} : vector<8x128xf32> to vector<1x128xf32>
    %36 = vector.broadcast %35 : vector<1x128xf32> to vector<2x128xf32>
    %37 = arith.mulf %34, %36 : vector<2x128xf32>
    %cst_18 = arith.constant 1.000000e+00 : f32
    %38 = vector.broadcast %cst_18 : f32 to vector<1x128xf32>
    %39 = arith.subf %38, %35 : vector<1x128xf32>
    %40 = vector.broadcast %39 : vector<1x128xf32> to vector<2x128xf32>
    %41 = arith.addf %37, %40 : vector<2x128xf32>
    %42 = arith.mulf %29, %41 : vector<2x128xf32>
    %43 = vector.extract_strided_slice %0 {offsets = [0, 3, 0], sizes = [2, 1, 128], strides = [1, 1, 1]} : vector<2x8x128xf32> to vector<2x1x128xf32>
    %44 = vector.shape_cast %43 : vector<2x1x128xf32> to vector<2x128xf32>
    %c3 = arith.constant 3 : index
    %c0_19 = arith.constant 0 : index
    %c0_20 = arith.constant 0 : index
    %45 = vector.load %arg2[%c3, %c0_19, %c0_20] : memref<8x128x128xf32, #tpu.memory_space<vmem>>, vector<1x128x128xf32>
    %46 = vector.shape_cast %45 : vector<1x128x128xf32> to vector<128x128xf32>
    %cst_21 = arith.constant dense<0.000000e+00> : vector<2x128xf32>
    %47 = tpu.matmul %44, %46, %cst_21 {dimension_numbers = #tpu.dot_dimension_numbers<[1], [0], [0], [1], [0, 0, 1, 1], [], []>} : vector<2x128xf32>, vector<128x128xf32>, vector<2x128xf32> -> vector<2x128xf32>
    %48 = vector.extract_strided_slice %1 {offsets = [3, 0], sizes = [1, 128], strides = [1, 1]} : vector<8x128xf32> to vector<1x128xf32>
    %49 = vector.broadcast %48 : vector<1x128xf32> to vector<2x128xf32>
    %50 = arith.mulf %47, %49 : vector<2x128xf32>
    %cst_22 = arith.constant 1.000000e+00 : f32
    %51 = vector.broadcast %cst_22 : f32 to vector<1x128xf32>
    %52 = arith.subf %51, %48 : vector<1x128xf32>
    %53 = vector.broadcast %52 : vector<1x128xf32> to vector<2x128xf32>
    %54 = arith.addf %50, %53 : vector<2x128xf32>
    %55 = arith.mulf %42, %54 : vector<2x128xf32>
    %56 = vector.extract_strided_slice %0 {offsets = [0, 4, 0], sizes = [2, 1, 128], strides = [1, 1, 1]} : vector<2x8x128xf32> to vector<2x1x128xf32>
    %57 = vector.shape_cast %56 : vector<2x1x128xf32> to vector<2x128xf32>
    %c4 = arith.constant 4 : index
    %c0_23 = arith.constant 0 : index
    %c0_24 = arith.constant 0 : index
    %58 = vector.load %arg2[%c4, %c0_23, %c0_24] : memref<8x128x128xf32, #tpu.memory_space<vmem>>, vector<1x128x128xf32>
    %59 = vector.shape_cast %58 : vector<1x128x128xf32> to vector<128x128xf32>
    %cst_25 = arith.constant dense<0.000000e+00> : vector<2x128xf32>
    %60 = tpu.matmul %57, %59, %cst_25 {dimension_numbers = #tpu.dot_dimension_numbers<[1], [0], [0], [1], [0, 0, 1, 1], [], []>} : vector<2x128xf32>, vector<128x128xf32>, vector<2x128xf32> -> vector<2x128xf32>
    %61 = vector.extract_strided_slice %1 {offsets = [4, 0], sizes = [1, 128], strides = [1, 1]} : vector<8x128xf32> to vector<1x128xf32>
    %62 = vector.broadcast %61 : vector<1x128xf32> to vector<2x128xf32>
    %63 = arith.mulf %60, %62 : vector<2x128xf32>
    %cst_26 = arith.constant 1.000000e+00 : f32
    %64 = vector.broadcast %cst_26 : f32 to vector<1x128xf32>
    %65 = arith.subf %64, %61 : vector<1x128xf32>
    %66 = vector.broadcast %65 : vector<1x128xf32> to vector<2x128xf32>
    %67 = arith.addf %63, %66 : vector<2x128xf32>
    %68 = arith.mulf %55, %67 : vector<2x128xf32>
    %69 = vector.extract_strided_slice %0 {offsets = [0, 5, 0], sizes = [2, 1, 128], strides = [1, 1, 1]} : vector<2x8x128xf32> to vector<2x1x128xf32>
    %70 = vector.shape_cast %69 : vector<2x1x128xf32> to vector<2x128xf32>
    %c5 = arith.constant 5 : index
    %c0_27 = arith.constant 0 : index
    %c0_28 = arith.constant 0 : index
    %71 = vector.load %arg2[%c5, %c0_27, %c0_28] : memref<8x128x128xf32, #tpu.memory_space<vmem>>, vector<1x128x128xf32>
    %72 = vector.shape_cast %71 : vector<1x128x128xf32> to vector<128x128xf32>
    %cst_29 = arith.constant dense<0.000000e+00> : vector<2x128xf32>
    %73 = tpu.matmul %70, %72, %cst_29 {dimension_numbers = #tpu.dot_dimension_numbers<[1], [0], [0], [1], [0, 0, 1, 1], [], []>} : vector<2x128xf32>, vector<128x128xf32>, vector<2x128xf32> -> vector<2x128xf32>
    %74 = vector.extract_strided_slice %1 {offsets = [5, 0], sizes = [1, 128], strides = [1, 1]} : vector<8x128xf32> to vector<1x128xf32>
    %75 = vector.broadcast %74 : vector<1x128xf32> to vector<2x128xf32>
    %76 = arith.mulf %73, %75 : vector<2x128xf32>
    %cst_30 = arith.constant 1.000000e+00 : f32
    %77 = vector.broadcast %cst_30 : f32 to vector<1x128xf32>
    %78 = arith.subf %77, %74 : vector<1x128xf32>
    %79 = vector.broadcast %78 : vector<1x128xf32> to vector<2x128xf32>
    %80 = arith.addf %76, %79 : vector<2x128xf32>
    %81 = arith.mulf %68, %80 : vector<2x128xf32>
    %82 = vector.extract_strided_slice %0 {offsets = [0, 6, 0], sizes = [2, 1, 128], strides = [1, 1, 1]} : vector<2x8x128xf32> to vector<2x1x128xf32>
    %83 = vector.shape_cast %82 : vector<2x1x128xf32> to vector<2x128xf32>
    %c6 = arith.constant 6 : index
    %c0_31 = arith.constant 0 : index
    %c0_32 = arith.constant 0 : index
    %84 = vector.load %arg2[%c6, %c0_31, %c0_32] : memref<8x128x128xf32, #tpu.memory_space<vmem>>, vector<1x128x128xf32>
    %85 = vector.shape_cast %84 : vector<1x128x128xf32> to vector<128x128xf32>
    %cst_33 = arith.constant dense<0.000000e+00> : vector<2x128xf32>
    %86 = tpu.matmul %83, %85, %cst_33 {dimension_numbers = #tpu.dot_dimension_numbers<[1], [0], [0], [1], [0, 0, 1, 1], [], []>} : vector<2x128xf32>, vector<128x128xf32>, vector<2x128xf32> -> vector<2x128xf32>
    %87 = vector.extract_strided_slice %1 {offsets = [6, 0], sizes = [1, 128], strides = [1, 1]} : vector<8x128xf32> to vector<1x128xf32>
    %88 = vector.broadcast %87 : vector<1x128xf32> to vector<2x128xf32>
    %89 = arith.mulf %86, %88 : vector<2x128xf32>
    %cst_34 = arith.constant 1.000000e+00 : f32
    %90 = vector.broadcast %cst_34 : f32 to vector<1x128xf32>
    %91 = arith.subf %90, %87 : vector<1x128xf32>
    %92 = vector.broadcast %91 : vector<1x128xf32> to vector<2x128xf32>
    %93 = arith.addf %89, %92 : vector<2x128xf32>
    %94 = arith.mulf %81, %93 : vector<2x128xf32>
    %95 = vector.extract_strided_slice %0 {offsets = [0, 7, 0], sizes = [2, 1, 128], strides = [1, 1, 1]} : vector<2x8x128xf32> to vector<2x1x128xf32>
    %96 = vector.shape_cast %95 : vector<2x1x128xf32> to vector<2x128xf32>
    %c7 = arith.constant 7 : index
    %c0_35 = arith.constant 0 : index
    %c0_36 = arith.constant 0 : index
    %97 = vector.load %arg2[%c7, %c0_35, %c0_36] : memref<8x128x128xf32, #tpu.memory_space<vmem>>, vector<1x128x128xf32>
    %98 = vector.shape_cast %97 : vector<1x128x128xf32> to vector<128x128xf32>
    %cst_37 = arith.constant dense<0.000000e+00> : vector<2x128xf32>
    %99 = tpu.matmul %96, %98, %cst_37 {dimension_numbers = #tpu.dot_dimension_numbers<[1], [0], [0], [1], [0, 0, 1, 1], [], []>} : vector<2x128xf32>, vector<128x128xf32>, vector<2x128xf32> -> vector<2x128xf32>
    %100 = vector.extract_strided_slice %1 {offsets = [7, 0], sizes = [1, 128], strides = [1, 1]} : vector<8x128xf32> to vector<1x128xf32>
    %101 = vector.broadcast %100 : vector<1x128xf32> to vector<2x128xf32>
    %102 = arith.mulf %99, %101 : vector<2x128xf32>
    %cst_38 = arith.constant 1.000000e+00 : f32
    %103 = vector.broadcast %cst_38 : f32 to vector<1x128xf32>
    %104 = arith.subf %103, %100 : vector<1x128xf32>
    %105 = vector.broadcast %104 : vector<1x128xf32> to vector<2x128xf32>
    %106 = arith.addf %102, %105 : vector<2x128xf32>
    %107 = arith.mulf %94, %106 : vector<2x128xf32>
    %108 = vector.broadcast %2 : vector<1x128xf32> to vector<2x128xf32>
    %109 = arith.mulf %107, %108 : vector<2x128xf32>
    %cst_39 = arith.constant 1.000000e+00 : f32
    %110 = vector.broadcast %cst_39 : f32 to vector<1x128xf32>
    %111 = arith.subf %110, %2 : vector<1x128xf32>
    %cst_40 = arith.constant -1.000000e+30 : f32
    %112 = vector.broadcast %cst_40 : f32 to vector<1x128xf32>
    %113 = arith.mulf %111, %112 : vector<1x128xf32>
    %114 = vector.broadcast %113 : vector<1x128xf32> to vector<2x128xf32>
    %115 = arith.addf %109, %114 : vector<2x128xf32>
    %cst_41 = arith.constant dense<0xFF800000> : vector<2xf32>
    %116 = vector.multi_reduction <maximumf>, %115, %cst_41 [1] : vector<2x128xf32> to vector<2xf32>
    %117 = vector.shape_cast %116 : vector<2xf32> to vector<2x1xf32>
    %118 = vector.broadcast %117 : vector<2x1xf32> to vector<2x128xf32>
    %119 = arith.subf %115, %118 : vector<2x128xf32>
    %120 = math.exp %119 : vector<2x128xf32>
    %cst_42 = arith.constant dense<0.000000e+00> : vector<2xf32>
    %121 = vector.multi_reduction <add>, %120, %cst_42 [1] : vector<2x128xf32> to vector<2xf32>
    %122 = vector.shape_cast %121 : vector<2xf32> to vector<2x1xf32>
    %123 = tpu.reciprocal %122 {approx = true} : vector<2x1xf32> -> vector<2x1xf32>
    %124 = vector.broadcast %123 : vector<2x1xf32> to vector<2x128xf32>
    %125 = arith.mulf %120, %124 : vector<2x128xf32>
    %c0_43 = arith.constant 0 : index
    %c0_44 = arith.constant 0 : index
    %126 = vector.load %arg5[%c0_43, %c0_44] : memref<2x128xf32, #tpu.memory_space<vmem>>, vector<2x128xf32>
    tpu.vector_store %arg5[%c0_43, %c0_44], %125 {strides = array<i32>} : memref<2x128xf32, #tpu.memory_space<vmem>>, vector<2x128xf32>,
    return
  }
  func.func @transform_0(%arg0: i32) -> (i32, i32, i32) {
    %c0_i32 = arith.constant 0 : i32
    %c0_i32_0 = arith.constant 0 : i32
    %c0_i32_1 = arith.constant 0 : i32
    %c0_i32_2 = arith.constant 0 : i32
    return %c0_i32, %c0_i32_0, %c0_i32_1 : i32, i32, i32
  }
  func.func @transform_1(%arg0: i32) -> (i32, i32, i32) {
    %c0_i32 = arith.constant 0 : i32
    %c0_i32_0 = arith.constant 0 : i32
    %c0_i32_1 = arith.constant 0 : i32
    %c0_i32_2 = arith.constant 0 : i32
    return %c0_i32, %c0_i32_0, %c0_i32_1 : i32, i32, i32
  }
  func.func @transform_2(%arg0: i32) -> (i32, i32) {
    %c0_i32 = arith.constant 0 : i32
    %c0_i32_0 = arith.constant 0 : i32
    %c0_i32_1 = arith.constant 0 : i32
    return %c0_i32, %c0_i32_0 : i32, i32
  }
  func.func @transform_3(%arg0: i32) -> (i32, i32) {
    %c0_i32 = arith.constant 0 : i32
    %c0_i32_0 = arith.constant 0 : i32
    %c0_i32_1 = arith.constant 0 : i32
    return %c0_i32, %c0_i32_0 : i32, i32
  }
  func.func @transform_4(%arg0: i32) -> (i32, i32) {
    %c0_i32 = arith.constant 0 : i32
    %c0_i32_0 = arith.constant 0 : i32
    %c0_i32_1 = arith.constant 0 : i32
    return %c0_i32, %c0_i32_0 : i32, i32
  }
}

</mosaic_0001>

<bundles_post_ra>
// kernel: _lambda_.1
= control target key start
LH: loop header
LB: loop body
LE: loop exit
PB: predicated region body
PF: predicated region fallthrough
CT: control target
= control target key end

     0   :  { %9 = vsyncpa [#allocation3], 0  ;;  %s1855_s0 = inlined_call_operand.hbm [shape: f32[2,8,128], index: 0, kind: input, shape index: {}]   ;;  %s1856_s1 = inlined_call_operand.hbm [shape: f32[8,128,128], index: 1, kind: input, shape index: {}]   ;;  %s1857_s2 = inlined_call_operand.hbm [shape: f32[8,128], index: 2, kind: input, shape index: {}]   ;;  %s1858_s3 = inlined_call_operand.vmem [shape: f32[1,128], index: 3, kind: input, shape index: {}]   ;;  %s1859_s4 = inlined_call_operand.hbm [shape: f32[2,128], index: 4, kind: output, shape index: {}]  }
   0x1   :  { %10 = vsyncpa [#allocation6], 0 }
   0x2   :  { %11 = vsyncpa [#allocation4], 0  ;;  %s1637_s15 = smov [#allocation5]   ;;  %s1638_s17 = smov [#allocation2]  }
   0x3   :  { %s29_s16 = sshll.u32 %s1637_s15, 4  ;;  %s17_s18 = sshll.u32 %s1638_s17, 4  ;;  %s30_s16 = int_to_ptr.vmem [resolvable:$true] %s29_s16  ;;  %s1671_s18 = int_to_ptr.vmem [resolvable:$true] %s17_s18 }
   0x4   :  { %s1543_s21 = scalar_lea.hbm %s1856_s1, 16384 }
   0x5   :  { %p1544_p0 = scmp.ne.s32.totalorder %s1856_s1, %s1543_s21  ;;  %p1547_p1 = scmp.lt.u32.totalorder %s1543_s21, %s1856_s1 }
   0x7   :  { %p1549_p2 = pnand %p1547_p1, %p1544_p0 }
   0x9   :  { %1552 = shalt.err (!%p1549_p2)
}
   0xa   :  { %s1553_s26 = scalar_lea.vmem %s30_s16, 16384  ;;  %p1558_p4 = scmp.lt.s32.totalorder %s30_s16, %s30_s16 }
   0xb   :  { %p1554_p3 = scmp.ne.s32.totalorder %s30_s16, %s1553_s26  ;;  %p1559_p5 = scmp.lt.s32.totalorder %s1553_s26, %s1553_s26 }
   0xd   :  { %p1560_p6 = por %p1559_p5, %p1558_p4 }
   0xf   :  { %p1561_p7 = pnand %p1560_p6, %p1554_p3 }
  0x11   :  { %1564 = shalt.err (!%p1561_p7)
}
  0x12   :  { %s1639_s27 = smov 128   ;;  %s1640_s28 = smov 8  }
  0x13   :  { %35 = dma.hbm_to_vmem [thread:$0]  %s1856_s1, 16384, %s30_s16, [#allocation6], %s1639_s27, %s1639_s27, %s1640_s28  }
  0x14   :  { %s1565_s7 = scalar_lea.hbm %s1855_s0, 256 }
  0x15   :  { %p1566_p8 = scmp.ne.s32.totalorder %s1855_s0, %s1565_s7  ;;  %p1569_p9 = scmp.lt.u32.totalorder %s1565_s7, %s1855_s0 }
  0x17   :  { %p1571_p10 = pnand %p1569_p9, %p1566_p8 }
  0x19   :  { %1574 = shalt.err (!%p1571_p10)
}
  0x1a   :  { %s1575_s12 = scalar_lea.vmem %s1671_s18, 256  ;;  %p1580_p12 = scmp.lt.s32.totalorder %s1671_s18, %s1671_s18 }
  0x1b   :  { %p1576_p11 = scmp.ne.s32.totalorder %s1671_s18, %s1575_s12  ;;  %p1581_p13 = scmp.lt.s32.totalorder %s1575_s12, %s1575_s12 }
  0x1d   :  { %p1582_p0 = por %p1581_p13, %p1580_p12 }
  0x1f   :  { %p1583_p1 = pnand %p1582_p0, %p1576_p11 }
  0x21   :  { %1586 = shalt.err (!%p1583_p1)
}
  0x22   :  { %23 = dma.hbm_to_vmem [thread:$0]  %s1855_s0, 256, %s1671_s18, [#allocation3], %s1639_s27, %s1639_s27, %s1640_s28  }
  0x23   :  { %s1641_s14 = smov [#allocation7]   ;;  %s1587_s19 = scalar_lea.hbm %s1857_s2, 128 }
  0x24   :  { %s42_s15 = sshll.u32 %s1641_s14, 4  ;;  %p1588_p2 = scmp.ne.s32.totalorder %s1857_s2, %s1587_s19  ;;  %s43_s15 = int_to_ptr.vmem [resolvable:$true] %s42_s15 }
  0x25   :  { %p1591_p3 = scmp.lt.u32.totalorder %s1587_s19, %s1857_s2 }
  0x27   :  { %p1593_p4 = pnand %p1591_p3, %p1588_p2 }
  0x29   :  { %1596 = shalt.err (!%p1593_p4)
}
  0x2a   :  { %s1597_s24 = scalar_lea.vmem %s43_s15, 128  ;;  %p1602_p6 = scmp.lt.s32.totalorder %s43_s15, %s43_s15 }
  0x2b   :  { %p1598_p5 = scmp.ne.s32.totalorder %s43_s15, %s1597_s24  ;;  %p1603_p7 = scmp.lt.s32.totalorder %s1597_s24, %s1597_s24 }
  0x2d   :  { %p1604_p8 = por %p1603_p7, %p1602_p6 }
  0x2f   :  { %p1605_p9 = pnand %p1604_p8, %p1598_p5 }
  0x31   :  { %1608 = shalt.err (!%p1605_p9)
}
  0x32   :  { %45 = dma.hbm_to_vmem [thread:$0]  %s1857_s2, 128, %s43_s15, [#allocation6]  }
  0x33   :  { %1631 = dma.done.wait [#allocation3], 256  }
  0x34   :  { %1632 = vsyncadd [#allocation3], 4294967040 }
  0x35   :  { %1633 = dma.done.wait [#allocation6], 16512  }
  0x36   :  { %1634 = vsyncadd [#allocation6], 4294950784  ;;  %v1642_v0 = vmov 0.0|0.0   ;;  %vm1643_vm0 = vmmov 0   ;;  %v1644_v1 = vmov 0.0   ;;  %v61_v2 = vld [vmem:[#allocation5] sm:$0xff] }
  0x37   :  { %1338 = vmatprep.subr.bf16.mxu0 %v1642_v0  ;;  %1362 = vmatprep.subr.bf16.mxu1 %v1642_v0  ;;  %v62_v3 = vld [vmem:[#allocation5 + $0x8] sm:$0xff]  ;;  %v165_v4 = vld [vmem:[#allocation5 + $0x80] sm:$0xff]  ;;  %v63_v7 = vld [vmem:[#allocation5 + $0x10] sm:$0xff]  ;;  %vm80_vm1 = vcmask 1041409   ;;  %vm893_vm2 = vcmask 1041408  }
  0x38   :  { %1090 = vmatprep.mubr.msk.f32.mxu0 %vm1643_vm0, %v1644_v1  ;;  %1125 = vmatprep.mubr.msk.f32.mxu1 %vm1643_vm0, %v1644_v1  ;;  %v1339_v5 = vpack.c.bf16 %v62_v3, %v61_v2  ;;  %v166_v6 = vld [vmem:[#allocation5 + $0x88] sm:$0xff]  ;;  %v64_v8 = vld [vmem:[#allocation5 + $0x18] sm:$0xff]  ;;  %v167_v10 = vld [vmem:[#allocation5 + $0x90] sm:$0xff] }
  0x39   :  { %v1363_v9 = vpack.c.bf16 %v166_v6, %v165_v4  ;;  %v168_v11 = vld [vmem:[#allocation5 + $0x98] sm:$0xff]  ;;  %v1342_v12 = vpack.c.bf16 %v64_v8, %v63_v7  ;;  %v65_v14 = vld [vmem:[#allocation5 + $0x20] sm:$0xff]  ;;  %v66_v15 = vld [vmem:[#allocation5 + $0x28] sm:$0xff] }
  0x3a   :  { %1340 = vmatpush3.bf16.msra.mxu0 %v1339_v5  ;;  %v1366_v13 = vpack.c.bf16 %v168_v11, %v167_v10  ;;  %v169_v16 = vld [vmem:[#allocation5 + $0xa0] sm:$0xff]  ;;  %v170_v17 = vld [vmem:[#allocation5 + $0xa8] sm:$0xff]  ;;  %v1345_v18 = vpack.c.bf16 %v66_v15, %v65_v14  ;;  %v67_v20 = vld [vmem:[#allocation5 + $0x30] sm:$0xff] }
  0x3b   :  { %1364 = vmatpush3.bf16.msra.mxu1 %v1363_v9  ;;  %1341 = vmatprep.subr.bf16.mxu0 %v1642_v0  ;;  %v1369_v19 = vpack.c.bf16 %v170_v17, %v169_v16  ;;  %v68_v21 = vld [vmem:[#allocation5 + $0x38] sm:$0xff]  ;;  %v171_v22 = vld [vmem:[#allocation5 + $0xb0] sm:$0xff]  ;;  %v69_v25 = vld [vmem:[#allocation5 + $0x40] sm:$0xff] }
  0x3c   :  { %1365 = vmatprep.subr.bf16.mxu1 %v1642_v0  ;;  %v172_v23 = vld [vmem:[#allocation5 + $0xb8] sm:$0xff]  ;;  %v1348_v24 = vpack.c.bf16 %v68_v21, %v67_v20  ;;  %v70_v27 = vld [vmem:[#allocation5 + $0x48] sm:$0xff]  ;;  %v1725_v28 = vld [vmem:[#allocation2] sm:$0xff] }
  0x3d   :  { %v1372_v26 = vpack.c.bf16 %v172_v23, %v171_v22  ;;  %v1727_v29 = vld [vmem:[#allocation2 + $0x8] sm:$0xff]  ;;  %v173_v30 = vld [vmem:[#allocation5 + $0xc0] sm:$0xff]  ;;  %v174_v31 = vld [vmem:[#allocation5 + $0xc8] sm:$0xff]  ;;  %v486_v32 = vrot.slane %v1725_v28, 4  ;;  %v1351_v34 = vpack.c.bf16 %v70_v27, %v69_v25  ;;  %v588_v36 = vrot.slane %v1725_v28, 5 }
  0x3e   :  { %1343 = vmatpush3.bf16.msra.mxu0 %v1342_v12  ;;  %v487_v33 = vrot.slane %v1727_v29, 3  ;;  %v1375_v37 = vpack.c.bf16 %v174_v31, %v173_v30  ;;  %v71_v38 = vld [vmem:[#allocation5 + $0x50] sm:$0xff]  ;;  %v72_v39 = vld [vmem:[#allocation5 + $0x58] sm:$0xff]  ;;  %v589_v40 = vrot.slane %v1727_v29, 4  ;;  %v690_v41 = vrot.slane %v1725_v28, 6  ;;  %v73_v52 = vld [vmem:[#allocation5 + $0x60] sm:$0xff] }
  0x3f   :  { %1367 = vmatpush3.bf16.msra.mxu1 %v1366_v13  ;;  %1344 = vmatprep.subr.bf16.mxu0 %v1642_v0  ;;  %v175_v42 = vld [vmem:[#allocation5 + $0xd0] sm:$0xff]  ;;  %v176_v43 = vld [vmem:[#allocation5 + $0xd8] sm:$0xff]  ;;  %v691_v44 = vrot.slane %v1727_v29, 5  ;;  %v792_v45 = vrot.slane %v1725_v28, 7  ;;  %v793_v46 = vrot.slane %v1727_v29, 6  ;;  %v1354_v48 = vpack.c.bf16 %v72_v39, %v71_v38  ;;  %v74_v53 = vld [vmem:[#allocation5 + $0x68] sm:$0xff] }
  0x40   :  { %1368 = vmatprep.subr.bf16.mxu1 %v1642_v0  ;;  %v1733_v35 = vsel %vm80_vm1, %v487_v33, %v486_v32  ;;  %v1744_v47 = vsel %vm80_vm1, %v589_v40, %v588_v36  ;;  %v1378_v51 = vpack.c.bf16 %v176_v43, %v175_v42  ;;  %v177_v54 = vld [vmem:[#allocation5 + $0xe0] sm:$0xff]  ;;  %v178_v55 = vld [vmem:[#allocation5 + $0xe8] sm:$0xff]  ;;  %v1357_v56 = vpack.c.bf16 %v74_v53, %v73_v52  ;;  %v75_v58 = vld [vmem:[#allocation5 + $0x70] sm:$0xff] }
  0x41   :  { %v1747_v49 = vsel %vm80_vm1, %v691_v44, %v690_v41  ;;  %v1750_v50 = vsel %vm80_vm1, %v793_v46, %v792_v45  ;;  %v1381_v57 = vpack.c.bf16 %v178_v55, %v177_v54  ;;  %v76_v59 = vld [vmem:[#allocation5 + $0x78] sm:$0xff]  ;;  %v179_v60 = vld [vmem:[#allocation5 + $0xf0] sm:$0xff]  ;;  %v79_v63 = vrot.slane %v1727_v29, 7  ;;  %v266_v4 = vld [vmem:[#allocation5 + $0x100] sm:$0xff] }
  0x42   :  { %1346 = vmatpush3.bf16.msra.mxu0 %v1345_v18  ;;  %v180_v61 = vld [vmem:[#allocation5 + $0xf8] sm:$0xff]  ;;  %v1360_v62 = vpack.c.bf16 %v76_v59, %v75_v58  ;;  %v181_v3 = vrot.slane %v1725_v28, 1  ;;  %v267_v5 = vld [vmem:[#allocation5 + $0x108] sm:$0xff]  ;;  %v368_v6 = vld [vmem:[#allocation5 + $0x180] sm:$0xff]  ;;  %v282_v59 = vrot.slane %v1725_v28, 2 }
  0x43   :  { %1370 = vmatpush3.bf16.msra.mxu1 %v1369_v19  ;;  %1347 = vmatprep.subr.bf16.mxu0 %v1642_v0  ;;  %v1384_v2 = vpack.c.bf16 %v180_v61, %v179_v60  ;;  %v369_v7 = vld [vmem:[#allocation5 + $0x188] sm:$0xff]  ;;  %v81_v8 = vsel %vm80_vm1, %v79_v63, %v1725_v28  ;;  %v1387_v9 = vpack.c.bf16 %v267_v5, %v266_v4  ;;  %v268_v12 = vld [vmem:[#allocation5 + $0x110] sm:$0xff]  ;;  %v269_v13 = vld [vmem:[#allocation5 + $0x118] sm:$0xff]  ;;  %v283_v60 = vrot.slane %v1727_v29, 1 }
  0x44   :  { %1371 = vmatprep.subr.bf16.mxu1 %v1642_v0  ;;  %v182_v10 = vsel %vm80_vm1, %v1727_v29, %v181_v3  ;;  %v1411_v11 = vpack.c.bf16 %v369_v7, %v368_v6  ;;  %v370_v14 = vld [vmem:[#allocation5 + $0x190] sm:$0xff]  ;;  %v371_v15 = vld [vmem:[#allocation5 + $0x198] sm:$0xff]  ;;  %v1390_v16 = vpack.c.bf16 %v269_v13, %v268_v12  ;;  %v270_v18 = vld [vmem:[#allocation5 + $0x120] sm:$0xff]  ;;  %v385_v3 = vrot.slane %v1727_v29, 2 }
  0x45   :  { %v1414_v17 = vpack.c.bf16 %v371_v15, %v370_v14  ;;  %v271_v19 = vld [vmem:[#allocation5 + $0x128] sm:$0xff]  ;;  %v372_v20 = vld [vmem:[#allocation5 + $0x1a0] sm:$0xff]  ;;  %v273_v25 = vld [vmem:[#allocation5 + $0x138] sm:$0xff]  ;;  %v284_v6 = vsel %vm80_vm1, %v283_v60, %v282_v59 }
  0x46   :  { %1349 = vmatpush3.bf16.msra.mxu0 %v1348_v24  ;;  %v373_v21 = vld [vmem:[#allocation5 + $0x1a8] sm:$0xff]  ;;  %v1393_v22 = vpack.c.bf16 %v271_v19, %v270_v18  ;;  %v272_v24 = vld [vmem:[#allocation5 + $0x130] sm:$0xff]  ;;  %v375_v27 = vld [vmem:[#allocation5 + $0x1b8] sm:$0xff] }
  0x47   :  { %1373 = vmatpush3.bf16.msra.mxu1 %v1372_v26  ;;  %1350 = vmatprep.subr.bf16.mxu0 %v1642_v0  ;;  %v1417_v23 = vpack.c.bf16 %v373_v21, %v372_v20  ;;  %v374_v26 = vld [vmem:[#allocation5 + $0x1b0] sm:$0xff]  ;;  %v1396_v30 = vpack.c.bf16 %v273_v25, %v272_v24  ;;  %v274_v32 = vld [vmem:[#allocation5 + $0x140] sm:$0xff]  ;;  %v275_v33 = vld [vmem:[#allocation5 + $0x148] sm:$0xff] }
  0x48   :  { %1374 = vmatprep.subr.bf16.mxu1 %v1642_v0  ;;  %v1420_v31 = vpack.c.bf16 %v375_v27, %v374_v26  ;;  %v377_v36 = vld [vmem:[#allocation5 + $0x1c8] sm:$0xff]  ;;  %v276_v39 = vld [vmem:[#allocation5 + $0x150] sm:$0xff]  ;;  %v277_v40 = vld [vmem:[#allocation5 + $0x158] sm:$0xff] }
  0x49   :  { %v378_v41 = vld [vmem:[#allocation5 + $0x1d0] sm:$0xff]  ;;  %v379_v42 = vld [vmem:[#allocation5 + $0x1d8] sm:$0xff]  ;;  %v1402_v43 = vpack.c.bf16 %v277_v40, %v276_v39  ;;  %v278_v45 = vld [vmem:[#allocation5 + $0x160] sm:$0xff] }
  0x4a   :  { %1352 = vmatpush3.bf16.msra.mxu0 %v1351_v34  ;;  %v376_v34 = vld [vmem:[#allocation5 + $0x1c0] sm:$0xff]  ;;  %v1426_v44 = vpack.c.bf16 %v379_v42, %v378_v41  ;;  %v279_v46 = vld [vmem:[#allocation5 + $0x168] sm:$0xff]  ;;  %v280_v54 = vld [vmem:[#allocation5 + $0x170] sm:$0xff] }
  0x4b   :  { %1376 = vmatpush3.bf16.msra.mxu1 %v1375_v37  ;;  %1353 = vmatprep.subr.bf16.mxu0 %v1642_v0  ;;  %v1399_v37 = vpack.c.bf16 %v275_v33, %v274_v32  ;;  %v1423_v38 = vpack.c.bf16 %v377_v36, %v376_v34  ;;  %v1405_v52 = vpack.c.bf16 %v279_v46, %v278_v45  ;;  %v281_v55 = vld [vmem:[#allocation5 + $0x178] sm:$0xff]  ;;  %v471_v63 = vld [vmem:[#allocation5 + $0x208] sm:$0xff]  ;;  %v572_v4 = vld [vmem:[#allocation5 + $0x280] sm:$0xff] }
  0x4c   :  { %1377 = vmatprep.subr.bf16.mxu1 %v1642_v0  ;;  %v1408_v58 = vpack.c.bf16 %v281_v55, %v280_v54  ;;  %v573_v5 = vld [vmem:[#allocation5 + $0x288] sm:$0xff]  ;;  %v575_v29 = vld [vmem:[#allocation5 + $0x298] sm:$0xff]  ;;  %v474_v14 = vld [vmem:[#allocation5 + $0x220] sm:$0xff] }
  0x4d   :  { %v475_v15 = vld [vmem:[#allocation5 + $0x228] sm:$0xff]  ;;  %v476_v20 = vld [vmem:[#allocation5 + $0x230] sm:$0xff]  ;;  %v477_v21 = vld [vmem:[#allocation5 + $0x238] sm:$0xff] }
  0x4e   :  { %1355 = vmatpush3.bf16.msra.mxu0 %v1354_v48  ;;  %v380_v48 = vld [vmem:[#allocation5 + $0x1e0] sm:$0xff]  ;;  %v1441_v18 = vpack.c.bf16 %v475_v15, %v474_v14  ;;  %v1444_v24 = vpack.c.bf16 %v477_v21, %v476_v20  ;;  %v479_v27 = vld [vmem:[#allocation5 + $0x248] sm:$0xff]  ;;  %v480_v34 = vld [vmem:[#allocation5 + $0x250] sm:$0xff] }
  0x4f   :  { %1379 = vmatpush3.bf16.msra.mxu1 %v1378_v51  ;;  %1356 = vmatprep.subr.bf16.mxu0 %v1642_v0  ;;  %v381_v51 = vld [vmem:[#allocation5 + $0x1e8] sm:$0xff]  ;;  %v478_v26 = vld [vmem:[#allocation5 + $0x240] sm:$0xff]  ;;  %v481_v36 = vld [vmem:[#allocation5 + $0x258] sm:$0xff] }
  0x50   :  { %1380 = vmatprep.subr.bf16.mxu1 %v1642_v0  ;;  %v1429_v53 = vpack.c.bf16 %v381_v51, %v380_v48  ;;  %v1447_v32 = vpack.c.bf16 %v479_v27, %v478_v26  ;;  %v1450_v39 = vpack.c.bf16 %v481_v36, %v480_v34  ;;  %v482_v41 = vld [vmem:[#allocation5 + $0x260] sm:$0xff]  ;;  %v483_v42 = vld [vmem:[#allocation5 + $0x268] sm:$0xff]  ;;  %v484_v48 = vld [vmem:[#allocation5 + $0x270] sm:$0xff] }
  0x51   :  { %v1453_v45 = vpack.c.bf16 %v483_v42, %v482_v41  ;;  %v485_v51 = vld [vmem:[#allocation5 + $0x278] sm:$0xff]  ;;  %v777_v59 = vld [vmem:[#allocation5 + $0x388] sm:$0xff]  ;;  %v682_v14 = vld [vmem:[#allocation5 + $0x340] sm:$0xff] }
  0x52   :  { %1358 = vmatpush3.bf16.msra.mxu0 %v1357_v56  ;;  %v382_v56 = vld [vmem:[#allocation5 + $0x1f0] sm:$0xff]  ;;  %v1456_v54 = vpack.c.bf16 %v485_v51, %v484_v48  ;;  %v784_v15 = vld [vmem:[#allocation5 + $0x3c0] sm:$0xff]  ;;  %v685_v20 = vld [vmem:[#allocation5 + $0x358] sm:$0xff] }
  0x53   :  { %1382 = vmatpush3.bf16.msra.mxu1 %v1381_v57  ;;  %1359 = vmatprep.subr.bf16.mxu0 %v1642_v0  ;;  %v383_v57 = vld [vmem:[#allocation5 + $0x1f8] sm:$0xff]  ;;  %v786_v21 = vld [vmem:[#allocation5 + $0x3d0] sm:$0xff]  ;;  %v687_v26 = vld [vmem:[#allocation5 + $0x368] sm:$0xff] }
  0x54   :  { %1383 = vmatprep.subr.bf16.mxu1 %v1642_v0  ;;  %v1432_v61 = vpack.c.bf16 %v383_v57, %v382_v56  ;;  %v674_v56 = vld [vmem:[#allocation5 + $0x300] sm:$0xff]  ;;  %v675_v57 = vld [vmem:[#allocation5 + $0x308] sm:$0xff]  ;;  %v689_v34 = vld [vmem:[#allocation5 + $0x378] sm:$0xff] }
  0x55   :  { %v1483_v60 = vpack.c.bf16 %v675_v57, %v674_v56  ;;  %v788_v27 = vld [vmem:[#allocation5 + $0x3e0] sm:$0xff]  ;;  %v790_v36 = vld [vmem:[#allocation5 + $0x3f0] sm:$0xff] }
  0x56   :  { %1361 = vmatpush3.bf16.msra.mxu0 %v1360_v62  ;;  %v470_v62 = vld [vmem:[#allocation5 + $0x200] sm:$0xff] }
  0x57   :  { %1385 = vmatpush3.bf16.msra.mxu1 %v1384_v2  ;;  %1386 = vmatprep.subr.bf16.mxu0 %v1642_v0  ;;  %v384_v2 = vrot.slane %v1725_v28, 3  ;;  %v1435_v7 = vpack.c.bf16 %v471_v63, %v470_v62  ;;  %v574_v28 = vld [vmem:[#allocation5 + $0x290] sm:$0xff]  ;;  %v677_v63 = vld [vmem:[#allocation5 + $0x318] sm:$0xff]  ;;  %v59_v42 = vld [vmem:[#allocation7] sm:$0xff] }
  0x58   :  { %1410 = vmatprep.subr.bf16.mxu1 %v1642_v0  ;;  %v1462_v13 = vpack.c.bf16 %v575_v29, %v574_v28  ;;  %v676_v62 = vld [vmem:[#allocation5 + $0x310] sm:$0xff]  ;;  %v783_v29 = vld [vmem:[#allocation5 + $0x3b8] sm:$0xff] }
  0x59   :  { %1091 = vmatmul.mubr.f32.vlgmr.msra.gmra.mrb[0].mxu0 %v81_v8  ;;  %v386_v8 = vsel %vm80_vm1, %v385_v3, %v384_v2  ;;  %v778_v2 = vld [vmem:[#allocation5 + $0x390] sm:$0xff]  ;;  %v779_v3 = vld [vmem:[#allocation5 + $0x398] sm:$0xff] }
  0x5a   :  { %1126 = vmatmul.mubr.f32.vlgmr.msra.gmra.mrb[0].mxu1 %v182_v10  ;;  %1388 = vmatpush3.bf16.msra.mxu0 %v1387_v9  ;;  %v1459_v9 = vpack.c.bf16 %v573_v5, %v572_v4  ;;  %v472_v10 = vld [vmem:[#allocation5 + $0x210] sm:$0xff]  ;;  %v1486_v4 = vpack.c.bf16 %v677_v63, %v676_v62  ;;  %v1510_v5 = vpack.c.bf16 %v779_v3, %v778_v2 }
  0x5b   :  { %1412 = vmatpush3.bf16.msra.mxu1 %v1411_v11  ;;  %1389 = vmatprep.subr.bf16.mxu0 %v1642_v0  ;;  %v473_v11 = vld [vmem:[#allocation5 + $0x218] sm:$0xff]  ;;  %v782_v28 = vld [vmem:[#allocation5 + $0x3b0] sm:$0xff] }
  0x5c   :  { %1413 = vmatprep.subr.bf16.mxu1 %v1642_v0  ;;  %1160 = vmatprep.mubr.msk.f32.mxu0 %vm1643_vm0, %v1644_v1  ;;  %v1438_v12 = vpack.c.bf16 %v473_v11, %v472_v10  ;;  %v680_v10 = vld [vmem:[#allocation5 + $0x330] sm:$0xff]  ;;  %v681_v11 = vld [vmem:[#allocation5 + $0x338] sm:$0xff] }
  0x5d   :  { %1195 = vmatprep.mubr.msk.f32.mxu1 %vm1643_vm0, %v1644_v1 }
  0x5e   :  { %1391 = vmatpush3.bf16.msra.mxu0 %v1390_v16  ;;  %v576_v16 = vld [vmem:[#allocation5 + $0x2a0] sm:$0xff] }
  0x5f   :  { %1415 = vmatpush3.bf16.msra.mxu1 %v1414_v17  ;;  %1392 = vmatprep.subr.bf16.mxu0 %v1642_v0  ;;  %v577_v17 = vld [vmem:[#allocation5 + $0x2a8] sm:$0xff] }
  0x60   :  { %1416 = vmatprep.subr.bf16.mxu1 %v1642_v0  ;;  %v1465_v19 = vpack.c.bf16 %v577_v17, %v576_v16  ;;  %v785_v16 = vld [vmem:[#allocation5 + $0x3c8] sm:$0xff] }
  0x62   :  { %1394 = vmatpush3.bf16.msra.mxu0 %v1393_v22  ;;  %v578_v22 = vld [vmem:[#allocation5 + $0x2b0] sm:$0xff] }
  0x63   :  { %1418 = vmatpush3.bf16.msra.mxu1 %v1417_v23  ;;  %1395 = vmatprep.subr.bf16.mxu0 %v1642_v0  ;;  %v579_v23 = vld [vmem:[#allocation5 + $0x2b8] sm:$0xff] }
  0x64   :  { %1419 = vmatprep.subr.bf16.mxu1 %v1642_v0  ;;  %v1468_v25 = vpack.c.bf16 %v579_v23, %v578_v22  ;;  %v787_v22 = vld [vmem:[#allocation5 + $0x3d8] sm:$0xff] }
  0x66   :  { %1397 = vmatpush3.bf16.msra.mxu0 %v1396_v30  ;;  %v580_v30 = vld [vmem:[#allocation5 + $0x2c0] sm:$0xff] }
  0x67   :  { %1421 = vmatpush3.bf16.msra.mxu1 %v1420_v31  ;;  %1398 = vmatprep.subr.bf16.mxu0 %v1642_v0  ;;  %v581_v31 = vld [vmem:[#allocation5 + $0x2c8] sm:$0xff] }
  0x68   :  { %1422 = vmatprep.subr.bf16.mxu1 %v1642_v0  ;;  %v1471_v33 = vpack.c.bf16 %v581_v31, %v580_v30  ;;  %v789_v30 = vld [vmem:[#allocation5 + $0x3e8] sm:$0xff] }
  0x6a   :  { %1400 = vmatpush3.bf16.msra.mxu0 %v1399_v37  ;;  %v582_v37 = vld [vmem:[#allocation5 + $0x2d0] sm:$0xff] }
  0x6b   :  { %1424 = vmatpush3.bf16.msra.mxu1 %v1423_v38  ;;  %1401 = vmatprep.subr.bf16.mxu0 %v1642_v0  ;;  %v583_v38 = vld [vmem:[#allocation5 + $0x2d8] sm:$0xff] }
  0x6c   :  { %1425 = vmatprep.subr.bf16.mxu1 %v1642_v0  ;;  %v1474_v40 = vpack.c.bf16 %v583_v38, %v582_v37  ;;  %v791_v37 = vld [vmem:[#allocation5 + $0x3f8] sm:$0xff] }
  0x6e   :  { %1403 = vmatpush3.bf16.msra.mxu0 %v1402_v43  ;;  %v584_v43 = vld [vmem:[#allocation5 + $0x2e0] sm:$0xff] }
  0x6f   :  { %1427 = vmatpush3.bf16.msra.mxu1 %v1426_v44  ;;  %1404 = vmatprep.subr.bf16.mxu0 %v1642_v0  ;;  %v585_v44 = vld [vmem:[#allocation5 + $0x2e8] sm:$0xff] }
  0x70   :  { %1428 = vmatprep.subr.bf16.mxu1 %v1642_v0  ;;  %v1477_v46 = vpack.c.bf16 %v585_v44, %v584_v43 }
  0x72   :  { %1406 = vmatpush3.bf16.msra.mxu0 %v1405_v52  ;;  %v586_v52 = vld [vmem:[#allocation5 + $0x2f0] sm:$0xff] }
  0x73   :  { %1430 = vmatpush3.bf16.msra.mxu1 %v1429_v53  ;;  %1407 = vmatprep.subr.bf16.mxu0 %v1642_v0  ;;  %v587_v53 = vld [vmem:[#allocation5 + $0x2f8] sm:$0xff] }
  0x74   :  { %1431 = vmatprep.subr.bf16.mxu1 %v1642_v0  ;;  %v1480_v55 = vpack.c.bf16 %v587_v53, %v586_v52 }
  0x76   :  { %1409 = vmatpush3.bf16.msra.mxu0 %v1408_v58  ;;  %v776_v58 = vld [vmem:[#allocation5 + $0x380] sm:$0xff] }
  0x77   :  { %1433 = vmatpush3.bf16.msra.mxu1 %v1432_v61  ;;  %1434 = vmatprep.subr.bf16.mxu0 %v1642_v0  ;;  %v1507_v61 = vpack.c.bf16 %v777_v59, %v776_v58 }
  0x78   :  { %1458 = vmatprep.subr.bf16.mxu1 %v1642_v0 }
  0x79   :  { %1161 = vmatmul.mubr.f32.vlgmr.msra.gmra.mrb[2].mxu0 %v284_v6  ;;  %v678_v6 = vld [vmem:[#allocation5 + $0x320] sm:$0xff] }
  0x7a   :  { %1436 = vmatpush3.bf16.msra.mxu0 %v1435_v7  ;;  %1196 = vmatmul.mubr.f32.vlgmr.msra.gmra.mrb[2].mxu1 %v386_v8  ;;  %v679_v7 = vld [vmem:[#allocation5 + $0x328] sm:$0xff]  ;;  %v780_v8 = vld [vmem:[#allocation5 + $0x3a0] sm:$0xff] }
  0x7b   :  { %1460 = vmatpush3.bf16.msra.mxu1 %v1459_v9  ;;  %1437 = vmatprep.subr.bf16.mxu0 %v1642_v0  ;;  %v781_v9 = vld [vmem:[#allocation5 + $0x3a8] sm:$0xff] }
  0x7c   :  { %1461 = vmatprep.subr.bf16.mxu1 %v1642_v0  ;;  %1230 = vmatprep.mubr.msk.f32.mxu0 %vm1643_vm0, %v1644_v1 }
  0x7d   :  { %1265 = vmatprep.mubr.msk.f32.mxu1 %vm1643_vm0, %v1644_v1 }
  0x7e   :  { %1439 = vmatpush3.bf16.msra.mxu0 %v1438_v12  ;;  %v1492_v12 = vpack.c.bf16 %v681_v11, %v680_v10 }
  0x7f   :  { %1463 = vmatpush3.bf16.msra.mxu1 %v1462_v13  ;;  %1440 = vmatprep.subr.bf16.mxu0 %v1642_v0  ;;  %v1516_v13 = vpack.c.bf16 %v783_v29, %v782_v28 }
  0x80   :  { %1464 = vmatprep.subr.bf16.mxu1 %v1642_v0 }
  0x82   :  { %1442 = vmatpush3.bf16.msra.mxu0 %v1441_v18  ;;  %v1519_v18 = vpack.c.bf16 %v785_v16, %v784_v15 }
  0x83   :  { %1466 = vmatpush3.bf16.msra.mxu1 %v1465_v19  ;;  %1443 = vmatprep.subr.bf16.mxu0 %v1642_v0  ;;  %v684_v19 = vld [vmem:[#allocation5 + $0x350] sm:$0xff] }
  0x84   :  { %1467 = vmatprep.subr.bf16.mxu1 %v1642_v0  ;;  %v1498_v23 = vpack.c.bf16 %v685_v20, %v684_v19 }
  0x86   :  { %1445 = vmatpush3.bf16.msra.mxu0 %v1444_v24  ;;  %v1522_v24 = vpack.c.bf16 %v787_v22, %v786_v21 }
  0x87   :  { %1469 = vmatpush3.bf16.msra.mxu1 %v1468_v25  ;;  %1446 = vmatprep.subr.bf16.mxu0 %v1642_v0  ;;  %v686_v25 = vld [vmem:[#allocation5 + $0x360] sm:$0xff] }
  0x88   :  { %1470 = vmatprep.subr.bf16.mxu1 %v1642_v0  ;;  %v1501_v31 = vpack.c.bf16 %v687_v26, %v686_v25  ;;  %v60_v26 = vld [vmem:[%s1858_s3] sm:$0x1]  ;;  %s1645_s3 = smov [#allocation8]  }
  0x89   :  { %s912_s26 = sshll.u32 %s1645_s3, 4  ;;  %s913_s26 = int_to_ptr.vmem [resolvable:$true] %s912_s26 }
  0x8a   :  { %1448 = vmatpush3.bf16.msra.mxu0 %v1447_v32  ;;  %v1525_v32 = vpack.c.bf16 %v789_v30, %v788_v27  ;;  %s1609_s27 = scalar_lea.vmem %s913_s26, 32  ;;  %p1614_p11 = scmp.lt.s32.totalorder %s913_s26, %s913_s26 }
  0x8b   :  { %1472 = vmatpush3.bf16.msra.mxu1 %v1471_v33  ;;  %1449 = vmatprep.subr.bf16.mxu0 %v1642_v0  ;;  %v688_v33 = vld [vmem:[#allocation5 + $0x370] sm:$0xff]  ;;  %p1610_p10 = scmp.ne.s32.totalorder %s913_s26, %s1609_s27  ;;  %p1615_p12 = scmp.lt.s32.totalorder %s1609_s27, %s1609_s27 }
  0x8c   :  { %1473 = vmatprep.subr.bf16.mxu1 %v1642_v0  ;;  %v1504_v38 = vpack.c.bf16 %v689_v34, %v688_v33 }
  0x8d   :  { %p1616_p13 = por %p1615_p12, %p1614_p11 }
  0x8e   :  { %1451 = vmatpush3.bf16.msra.mxu0 %v1450_v39  ;;  %v1528_v39 = vpack.c.bf16 %v791_v37, %v790_v36 }
  0x8f   :  { %1475 = vmatpush3.bf16.msra.mxu1 %v1474_v40  ;;  %1452 = vmatprep.subr.bf16.mxu0 %v1642_v0  ;;  %v153_v40 = vlaneseq  ;;  %p1617_p0 = pnand %p1616_p13, %p1610_p10 }
  0x90   :  { %1476 = vmatprep.subr.bf16.mxu1 %v1642_v0 }
  0x91   :  { %v154_v41 = vshrl.u32 %v153_v40, 7 }
  0x92   :  { %1454 = vmatpush3.bf16.msra.mxu0 %v1453_v45  ;;  %v158_v45 = vsub.f32 1.0, %v59_v42 }
  0x93   :  { %1478 = vmatpush3.bf16.msra.mxu1 %v1477_v46  ;;  %1455 = vmatprep.subr.bf16.mxu0 %v1642_v0  ;;  %v1834_v43 = vsub.s32 0, %v154_v41  ;;  %v256_v44 = vsub.s32 1, %v154_v41  ;;  %v358_v59 = vsub.s32 2, %v154_v41  ;;  %v562_v11 = vsub.s32 4, %v154_v41 }
  0x94   :  { %1479 = vmatprep.subr.bf16.mxu1 %v1642_v0  ;;  %v664_v28 = vsub.s32 5, %v154_v41  ;;  %v868_v25 = vsub.s32 7, %v154_v41 }
  0x95   :  { %v156_v46 = vrot.slane %v59_v42, %v1834_v43  ;;  %v257_v48 = vrot.slane %v59_v42, %v256_v44  ;;  %v162_v51 = vrot.slane %v158_v45, %v1834_v43  ;;  %v364_v63 = vrot.slane %v158_v45, %v358_v59 }
  0x96   :  { %1457 = vmatpush3.bf16.msra.mxu0 %v1456_v54  ;;  %v563_v29 = vrot.slane %v59_v42, %v562_v11  ;;  %v869_v30 = vrot.slane %v59_v42, %v868_v25  ;;  %v874_v34 = vrot.slane %v158_v45, %v868_v25 }
  0x97   :  { %1481 = vmatpush3.bf16.msra.mxu1 %v1480_v55  ;;  %1482 = vmatprep.subr.bf16.mxu0 %v1642_v0 }
  0x98   :  { %1506 = vmatprep.subr.bf16.mxu1 %v1642_v0 }
  0x99   :  { %1231 = vmatmul.mubr.f32.vlgmr.msra.gmra.mrb[4].mxu0 %v1733_v35  ;;  %v1489_v35 = vpack.c.bf16 %v679_v7, %v678_v6 }
  0x9a   :  { %1484 = vmatpush3.bf16.msra.mxu0 %v1483_v60  ;;  %1266 = vmatmul.mubr.f32.vlgmr.msra.gmra.mrb[4].mxu1 %v1744_v47  ;;  %v1513_v47 = vpack.c.bf16 %v781_v9, %v780_v8  ;;  %v460_v60 = vsub.s32 3, %v154_v41 }
  0x9b   :  { %1508 = vmatpush3.bf16.msra.mxu1 %v1507_v61  ;;  %1485 = vmatprep.subr.bf16.mxu0 %v1642_v0  ;;  %v359_v61 = vrot.slane %v59_v42, %v358_v59 }
  0x9c   :  { %1509 = vmatprep.subr.bf16.mxu1 %v1642_v0  ;;  %1300 = vmatprep.mubr.msk.f32.mxu0 %vm1643_vm0, %v1644_v1  ;;  %v461_v62 = vrot.slane %v59_v42, %v460_v60  ;;  %v466_v3 = vrot.slane %v158_v45, %v460_v60 }
  0x9d   :  { %1335 = vmatprep.mubr.msk.f32.mxu1 %vm1643_vm0, %v1644_v1  ;;  %v683_v1 = vld [vmem:[#allocation5 + $0x348] sm:$0xff] }
  0x9e   :  { %1487 = vmatpush3.bf16.msra.mxu0 %v1486_v4  ;;  %v1495_v17 = vpack.c.bf16 %v683_v1, %v682_v14  ;;  %v670_v1 = vrot.slane %v158_v45, %v664_v28 }
  0x9f   :  { %1511 = vmatpush3.bf16.msra.mxu1 %v1510_v5  ;;  %1488 = vmatprep.subr.bf16.mxu0 %v1642_v0 }
  0xa0   :  { %1512 = vmatprep.subr.bf16.mxu1 %v1642_v0 }
  0xa2   :  { %1490 = vmatpush3.bf16.msra.mxu0 %v1489_v35 }
  0xa3   :  { %1514 = vmatpush3.bf16.msra.mxu1 %v1513_v47  ;;  %1491 = vmatprep.subr.bf16.mxu0 %v1642_v0 }
  0xa4   :  { %1515 = vmatprep.subr.bf16.mxu1 %v1642_v0 }
  0xa6   :  { %1493 = vmatpush3.bf16.msra.mxu0 %v1492_v12  ;;  %v665_v12 = vrot.slane %v59_v42, %v664_v28 }
  0xa7   :  { %1517 = vmatpush3.bf16.msra.mxu1 %v1516_v13  ;;  %1494 = vmatprep.subr.bf16.mxu0 %v1642_v0  ;;  %v568_v13 = vrot.slane %v158_v45, %v562_v11 }
  0xa8   :  { %1518 = vmatprep.subr.bf16.mxu1 %v1642_v0 }
  0xaa   :  { %1496 = vmatpush3.bf16.msra.mxu0 %v1495_v17 }
  0xab   :  { %1520 = vmatpush3.bf16.msra.mxu1 %v1519_v18  ;;  %1497 = vmatprep.subr.bf16.mxu0 %v1642_v0 }
  0xac   :  { %1521 = vmatprep.subr.bf16.mxu1 %v1642_v0 }
  0xae   :  { %1499 = vmatpush3.bf16.msra.mxu0 %v1498_v23 }
  0xaf   :  { %1523 = vmatpush3.bf16.msra.mxu1 %v1522_v24  ;;  %1500 = vmatprep.subr.bf16.mxu0 %v1642_v0  ;;  %v766_v24 = vsub.s32 6, %v154_v41  ;;  %v881_v41 = vrot.slane %v60_v26, %v1834_v43 }
  0xb0   :  { %1524 = vmatprep.subr.bf16.mxu1 %v1642_v0 }
  0xb1   :  { %v767_v27 = vrot.slane %v59_v42, %v766_v24 }
  0xb2   :  { %1502 = vmatpush3.bf16.msra.mxu0 %v1501_v31  ;;  %v772_v31 = vrot.slane %v158_v45, %v766_v24 }
  0xb3   :  { %1526 = vmatpush3.bf16.msra.mxu1 %v1525_v32  ;;  %1503 = vmatprep.subr.bf16.mxu0 %v1642_v0  ;;  %v884_v32 = vsub.f32 1.0, %v60_v26 }
  0xb4   :  { %1527 = vmatprep.subr.bf16.mxu1 %v1642_v0  ;;  %v262_v0 = vrot.slane %v158_v45, %v256_v44 }
  0xb6   :  { %1505 = vmatpush3.bf16.msra.mxu0 %v1504_v38 }
  0xb7   :  { %1529 = vmatpush3.bf16.msra.mxu1 %v1528_v39 }
  0xb9   :  { %1301 = vmatmul.mubr.f32.vlgmr.msra.gmra.mrb[6].mxu0 %v1747_v49 }
  0xba   :  { %1336 = vmatmul.mubr.f32.vlgmr.msra.gmra.mrb[6].mxu1 %v1750_v50 }
 0x12c   :  { %v149_v52 = vpop.f32.mrb[0].mxu0 }
 0x12d   :  { %v157_v53 = vmul.f32 %v156_v46, %v149_v52  ;;  %v1092_v54 = vpop.f32.mrb[1].mxu0  ;;  %v250_v55 = vpop.f32.mrb[0].mxu1  ;;  %v885_v46 = vmul.f32 -1e+30, %v884_v32 }
 0x12e   :  { %v258_v49 = vmul.f32 %v257_v48, %v250_v55  ;;  %v1127_v56 = vpop.f32.mrb[1].mxu1 }
 0x12f   :  { %v163_v50 = vadd.f32 %v162_v51, %v157_v53 }
 0x130   :  { %v263_v57 = vadd.f32 %v262_v0, %v258_v49  ;;  %v890_v0 = vrot.slane %v885_v46, %v1834_v43 }
 0x132   :  { %v264_v58 = vmul.f32 %v263_v57, %v163_v50 }
 0x14c   :  { %v352_v2 = vpop.f32.mrb[2].mxu0 }
 0x14d   :  { %v360_v4 = vmul.f32 %v359_v61, %v352_v2  ;;  %v1162_v5 = vpop.f32.mrb[3].mxu0  ;;  %v454_v6 = vpop.f32.mrb[2].mxu1 }
 0x14e   :  { %v462_v7 = vmul.f32 %v461_v62, %v454_v6  ;;  %v1197_v8 = vpop.f32.mrb[3].mxu1 }
 0x14f   :  { %v365_v9 = vadd.f32 %v364_v63, %v360_v4 }
 0x150   :  { %v467_v35 = vadd.f32 %v466_v3, %v462_v7 }
 0x151   :  { %v366_v47 = vmul.f32 %v365_v9, %v264_v58 }
 0x153   :  { %v468_v10 = vmul.f32 %v467_v35, %v366_v47 }
 0x16c   :  { %v556_v14 = vpop.f32.mrb[4].mxu0 }
 0x16d   :  { %v564_v15 = vmul.f32 %v563_v29, %v556_v14  ;;  %v1232_v16 = vpop.f32.mrb[5].mxu0  ;;  %v658_v17 = vpop.f32.mrb[4].mxu1 }
 0x16e   :  { %v666_v18 = vmul.f32 %v665_v12, %v658_v17  ;;  %v1267_v19 = vpop.f32.mrb[5].mxu1 }
 0x16f   :  { %v569_v20 = vadd.f32 %v568_v13, %v564_v15 }
 0x170   :  { %v671_v21 = vadd.f32 %v670_v1, %v666_v18 }
 0x171   :  { %v570_v22 = vmul.f32 %v569_v20, %v468_v10 }
 0x173   :  { %v672_v23 = vmul.f32 %v671_v21, %v570_v22 }
 0x18c   :  { %v760_v33 = vpop.f32.mrb[6].mxu0 }
 0x18d   :  { %v768_v36 = vmul.f32 %v767_v27, %v760_v33  ;;  %v1302_v37 = vpop.f32.mrb[7].mxu0  ;;  %v862_v38 = vpop.f32.mrb[6].mxu1 }
 0x18e   :  { %v870_v39 = vmul.f32 %v869_v30, %v862_v38  ;;  %v1337_v40 = vpop.f32.mrb[7].mxu1 }
 0x18f   :  { %v773_v44 = vadd.f32 %v772_v31, %v768_v36 }
 0x190   :  { %v875_v48 = vadd.f32 %v874_v34, %v870_v39 }
 0x191   :  { %v774_v51 = vmul.f32 %v773_v44, %v672_v23 }
 0x193   :  { %v876_v52 = vmul.f32 %v875_v48, %v774_v51 }
 0x195   :  { %v883_v53 = vmul.f32 %v881_v41, %v876_v52 }
 0x197   :  { %v892_v42 = vadd.f32 %v890_v0, %v883_v53 }
 0x199   :  { %v894_v54 = vsel %vm893_vm2, %v892_v42, -inf }
 0x19a   :  { %895 = vmax.xlane.f32.xlu0 %v894_v54 }
 0x227   :  { %v896_v45 = vpop.xlane.xlu0 %895 }
 0x228   :  { %v897_v55 = vsub.f32 %v892_v42, %v896_v45 }
 0x22a   :  { %v898_v49 = vmul.f32 1.442695, %v897_v55 }
 0x22c   :  { %1539 = vpow2.f32 %v898_v49 }
 0x236   :  { %v1540_v56 = vpop.eup %1539 }
 0x237   :  { %v900_v50 = vsel %vm893_vm2, %v1540_v56, 0.0 }
 0x238   :  { %901 = vadd.xlane.f32.xlu0 %v900_v50 }
 0x2c5   :  { %v902_v57 = vpop.xlane.xlu0 %901 }
 0x2c6   :  { %1541 = vrcp.f32 %v902_v57 }
 0x2d0   :  { %v1542_v58 = vpop.eup %1541 }
 0x2d1   :  { %v904_v59 = vmul.f32 %v1542_v58, %v1540_v56 }
 0x2d3   :  { %905 = vst [vmem:[#allocation8] sm:$0x3] %v904_v59 }
 0x2d4   :  { %1620 = shalt.err (!%p1617_p0)
}
 0x2d5   :  { %s1621_s30 = scalar_lea.hbm %s1859_s4, 32 }
 0x2d6   :  { %p1622_p1 = scmp.ne.s32.totalorder %s1859_s4, %s1621_s30  ;;  %p1625_p2 = scmp.lt.u32.totalorder %s1621_s30, %s1859_s4 }
 0x2d8   :  { %p1627_p3 = pnand %p1625_p2, %p1622_p1 }
 0x2da   :  { %1630 = shalt.err (!%p1627_p3)
}
 0x2db   :  { %915 = dma.vmem_to_hbm [thread:$0]  %s913_s26, 32, %s1859_s4, [#allocation4]  }
 0x2dc   :  { %1635 = dma.done.wait [#allocation4], 32  }
 0x2dd   :  { %1636 = vsyncadd [#allocation4], 4294967264 }
 0x2de   :  { %919 = vsyncpa [#allocation3], 1 }
 0x2df   :  { %920 = vsyncpa [#allocation6], 1 }
 0x2e0   :  { %921 = vsyncpa [#allocation4], 1 }

</bundles_post_ra>
